<compile_context>
chip_gen: v5e
topology: v5e:2x2
jax: 0.10.0
libtpu: 0.0.40
codegen_flags: <defaults>
</compile_context>

<pallas_src>
import numpy as np

import jax
import jax.numpy as jnp
from jax.experimental import pallas as pl
from jax.experimental.pallas import tpu as pltpu


def _round_up(v, m):
    return -(-v // m) * m


def _unroll_tables(size, schedule):
    """Static tables mapping group id g -> (row offset oy, column offset ox).

    Output token order within a batch is (g, h_f, w_f); the input token that
    lands there sits at (h_f * Ty + oy(g), w_f * Tx + ox(g)).
    """
    ty = 1
    tx = 1
    for sy, sx in schedule:
        ty *= sy
        tx *= sx
    g_total = ty * tx
    radices = []
    for sy, sx in schedule:
        radices.extend([sy, sx])
    oy = np.zeros((max(g_total, 1),), np.int64)
    ox = np.zeros((max(g_total, 1),), np.int64)
    for g in range(g_total):
        rem = g
        digits = []
        for r in reversed(radices):
            digits.append(rem % r)
            rem //= r
        digits = digits[::-1]  # [d1y, d1x, d2y, d2x, ...] earliest stage most significant
        py = 1
        px = 1
        for i, (sy, sx) in enumerate(schedule):
            oy[g] += digits[2 * i] * py
            ox[g] += digits[2 * i + 1] * px
            py *= sy
            px *= sx
    return oy, ox, ty, tx


def _unroll_reference(x, size, schedule):
    """Pure-JAX transcription of the PyTorch Unroll.forward (verification only)."""
    b, _, c = x.shape
    cur = size
    y = x.reshape(b, cur[0], cur[1], c)
    for sy, sx in schedule:
        cur = (cur[0] // sy, cur[1] // sx)
        y = y.reshape(y.shape[0], cur[0], sy, cur[1], sx, c)
        y = jnp.transpose(y, (0, 2, 4, 1, 3, 5))
        y = y.reshape(-1, cur[0], cur[1], c)
    return y.reshape(b, size[0] * size[1], c)


def _vmem_capacity_bytes():
    try:
        info = pltpu.get_tpu_info()
        return int(getattr(info, "vmem_capacity_bytes", 64 * 1024 * 1024))
    except Exception:
        return 64 * 1024 * 1024  # conservative default (v7x per-core VMEM)


def _pick_blocks(b, hf, unit_bytes, budget_bytes):
    """Pick (bt, hfb): batch elements and h_f rows per grid step."""
    max_units = max(1, budget_bytes // (2 * unit_bytes))  # x2: double buffering
    units = min(max_units, b * hf)
    if units >= hf:
        hfb = hf
        bt = min(b, units // hf)
    else:
        bt = 1
        hfb = max(1, units)
    # Keep >= 2 grid steps when the data allows: gives the pipeline something
    # to overlap and lets a 2-TensorCore chip split the copy.
    if pl.cdiv(b, bt) * pl.cdiv(hf, hfb) < 2:
        if b >= 2:
            bt = max(1, b // 2)
        elif hf >= 2:
            hfb = max(1, hf // 2)
    return bt, hfb


def unroll_pallas(x, size, schedule):
    b, n, c = x.shape
    h, w = size
    if n != h * w:
        raise ValueError("token count must equal H*W")
    oy_tab, ox_tab, ty, tx = _unroll_tables(size, schedule)
    g_total = ty * tx
    if g_total == 1:  # empty schedule -> identity permutation
        return x
    if h % ty != 0 or w % tx != 0:
        raise ValueError("unroll schedule must evenly divide the token grid")
    hf, wf = h // ty, w // tx

    # Free metadata reshape: [B, N, C] -> [B, H_f, Ty, W_f, Tx*C].
    x5 = x.reshape(b, hf, ty, wf, tx * c)

    itemsize = x.dtype.itemsize
    sub = {4: 8, 2: 16, 1: 32}.get(itemsize, 8)      # sublane packing of 2nd-minor dim
    wf_p = _round_up(wf, sub)
    # Padded VMEM bytes of one (batch element, h_f row) slice of the in/out blocks.
    in_unit = ty * wf_p * _round_up(tx * c, 128) * itemsize
    out_unit = g_total * wf_p * _round_up(c, 128) * itemsize
    unit = in_unit + out_unit

    phys = _vmem_capacity_bytes()
    buffer_budget = min(40 * 1024 * 1024, (2 * phys) // 5)
    bt, hfb = _pick_blocks(b, hf, unit, buffer_budget)

    block_bytes = bt * hfb * unit
    vmem_limit = max(32 * 1024 * 1024, 2 * block_bytes + 16 * 1024 * 1024)
    vmem_limit = int(min(vmem_limit, phys - 4 * 1024 * 1024))

    def unroll_kernel(x_ref, o_ref):
        # x_ref: (bt, hfb, Ty, W_f, Tx*C) -- whole token slab of this tile.
        # o_ref: (bt, G, hfb, W_f, C)     -- all G groups of the same tile.
        # All indices are static Python ints, so each group copy is a whole
        # block, layout-matched assignment (no masked per-row stores, no
        # dynamic slices) and the group loop is fully folded into one step.
        for g in range(g_total):
            lo = int(ox_tab[g]) * c
            o_ref[:, g] = x_ref[:, :, int(oy_tab[g]), :, lo:lo + c]

    out = pl.pallas_call(
        unroll_kernel,
        grid=(pl.cdiv(b, bt), pl.cdiv(hf, hfb)),
        in_specs=[
            pl.BlockSpec((bt, hfb, ty, wf, tx * c),
                         lambda bi, hi: (bi, hi, 0, 0, 0)),
        ],
        out_specs=pl.BlockSpec((bt, g_total, hfb, wf, c),
                               lambda bi, hi: (bi, 0, hi, 0, 0)),
        out_shape=jax.ShapeDtypeStruct((b, g_total, hf, wf, c), x.dtype),
        compiler_params=pltpu.CompilerParams(
            dimension_semantics=("parallel", "parallel"),
            vmem_limit_bytes=vmem_limit,
        ),
        cost_estimate=pl.CostEstimate(
            flops=0, transcendentals=0,
            bytes_accessed=2 * b * n * c * itemsize),
    )(x5)

    # Memory order of (b, g, h_f, w_f, c) already matches the module's output
    # token order -> free reshape back to [B, N, C].
    return out.reshape(b, n, c)


if __name__ == "__main__":
    key = jax.random.PRNGKey(0)
    k1, k2 = jax.random.split(key)

    # Config 1: Hiera-style -- 64x64 input, patch stride 4 -> 16x16 token grid,
    # two (2, 2) unroll stages, C a multiple of 128.
    size1, sched1 = (16, 16), [(2, 2), (2, 2)]
    b1, c1 = 2, 128
    x1 = jax.random.normal(k1, (b1, size1[0] * size1[1], c1), dtype=jnp.float32)
    out1 = jax.block_until_ready(unroll_pallas(x1, size1, sched1))
    ref1 = _unroll_reference(x1, size1, sched1)
    assert out1.shape == x1.shape
    assert bool(jnp.array_equal(out1, ref1)), "Pallas Unroll mismatch (symmetric)"

    # Config 2: asymmetric schedule (Ty != Tx) and C not a multiple of 128
    # (exercises the unaligned lane-slab path that previously hit the fallback).
    size2, sched2 = (12, 8), [(2, 1), (3, 2)]
    b2, c2 = 4, 96
    x2 = jax.random.normal(k2, (b2, size2[0] * size2[1], c2), dtype=jnp.float32)
    out2 = jax.block_until_ready(unroll_pallas(x2, size2, sched2))
    ref2 = _unroll_reference(x2, size2, sched2)
    assert out2.shape == x2.shape
    assert bool(jnp.array_equal(out2, ref2)), "Pallas Unroll mismatch (asymmetric)"

    print("KERNEL_OK")
</pallas_src>

<mosaic_0001>
module attributes {stable_mosaic.version = 11 : i64} {
  func.func @unroll_kernel(%arg0: i32, %arg1: i32, %arg2: memref<1x4x4x4x512xf32, #tpu.memory_space<vmem>>, %arg3: memref<1x16x4x4x128xf32, #tpu.memory_space<vmem>>) attributes {dimension_semantics = [#tpu.dimension_semantics<parallel>, #tpu.dimension_semantics<parallel>], iteration_bounds = array<i64: 2, 1>, scalar_prefetch = 0 : i64, scratch_operands = 0 : i64, tpu.core_type = #tpu.core_type<tc>, window_params = [{transform_indices = @transform_0, window_bounds = array<i64: 1, 4, 4, 4, 512>}, {transform_indices = @transform_1, window_bounds = array<i64: 1, 16, 4, 4, 128>}]} {
    %c0 = arith.constant 0 : index
    %c0_0 = arith.constant 0 : index
    %c0_1 = arith.constant 0 : index
    %c0_2 = arith.constant 0 : index
    %c0_3 = arith.constant 0 : index
    %0 = vector.load %arg2[%c0, %c0_0, %c0_1, %c0_2, %c0_3] : memref<1x4x4x4x512xf32, #tpu.memory_space<vmem>>, vector<1x4x1x4x128xf32>
    %1 = vector.shape_cast %0 : vector<1x4x1x4x128xf32> to vector<1x4x4x128xf32>
    %c0_4 = arith.constant 0 : index
    %c0_5 = arith.constant 0 : index
    %c0_6 = arith.constant 0 : index
    %c0_7 = arith.constant 0 : index
    %c0_8 = arith.constant 0 : index
    %2 = vector.load %arg3[%c0_4, %c0_5, %c0_6, %c0_7, %c0_8] : memref<1x16x4x4x128xf32, #tpu.memory_space<vmem>>, vector<1x1x4x4x128xf32>
    %3 = vector.shape_cast %2 : vector<1x1x4x4x128xf32> to vector<1x4x4x128xf32>
    %4 = vector.shape_cast %1 : vector<1x4x4x128xf32> to vector<1x1x4x4x128xf32>
    tpu.vector_store %arg3[%c0_4, %c0_5, %c0_6, %c0_7, %c0_8], %4 {strides = array<i32>} : memref<1x16x4x4x128xf32, #tpu.memory_space<vmem>>, vector<1x1x4x4x128xf32>,
    %c0_9 = arith.constant 0 : index
    %c0_10 = arith.constant 0 : index
    %c0_11 = arith.constant 0 : index
    %c0_12 = arith.constant 0 : index
    %c256 = arith.constant 256 : index
    %5 = vector.load %arg2[%c0_9, %c0_10, %c0_11, %c0_12, %c256] : memref<1x4x4x4x512xf32, #tpu.memory_space<vmem>>, vector<1x4x1x4x128xf32>
    %6 = vector.shape_cast %5 : vector<1x4x1x4x128xf32> to vector<1x4x4x128xf32>
    %c0_13 = arith.constant 0 : index
    %c1 = arith.constant 1 : index
    %c0_14 = arith.constant 0 : index
    %c0_15 = arith.constant 0 : index
    %c0_16 = arith.constant 0 : index
    %7 = vector.load %arg3[%c0_13, %c1, %c0_14, %c0_15, %c0_16] : memref<1x16x4x4x128xf32, #tpu.memory_space<vmem>>, vector<1x1x4x4x128xf32>
    %8 = vector.shape_cast %7 : vector<1x1x4x4x128xf32> to vector<1x4x4x128xf32>
    %9 = vector.shape_cast %6 : vector<1x4x4x128xf32> to vector<1x1x4x4x128xf32>
    tpu.vector_store %arg3[%c0_13, %c1, %c0_14, %c0_15, %c0_16], %9 {strides = array<i32>} : memref<1x16x4x4x128xf32, #tpu.memory_space<vmem>>, vector<1x1x4x4x128xf32>,
    %c0_17 = arith.constant 0 : index
    %c0_18 = arith.constant 0 : index
    %c2 = arith.constant 2 : index
    %c0_19 = arith.constant 0 : index
    %c0_20 = arith.constant 0 : index
    %10 = vector.load %arg2[%c0_17, %c0_18, %c2, %c0_19, %c0_20] : memref<1x4x4x4x512xf32, #tpu.memory_space<vmem>>, vector<1x4x1x4x128xf32>
    %11 = vector.shape_cast %10 : vector<1x4x1x4x128xf32> to vector<1x4x4x128xf32>
    %c0_21 = arith.constant 0 : index
    %c2_22 = arith.constant 2 : index
    %c0_23 = arith.constant 0 : index
    %c0_24 = arith.constant 0 : index
    %c0_25 = arith.constant 0 : index
    %12 = vector.load %arg3[%c0_21, %c2_22, %c0_23, %c0_24, %c0_25] : memref<1x16x4x4x128xf32, #tpu.memory_space<vmem>>, vector<1x1x4x4x128xf32>
    %13 = vector.shape_cast %12 : vector<1x1x4x4x128xf32> to vector<1x4x4x128xf32>
    %14 = vector.shape_cast %11 : vector<1x4x4x128xf32> to vector<1x1x4x4x128xf32>
    tpu.vector_store %arg3[%c0_21, %c2_22, %c0_23, %c0_24, %c0_25], %14 {strides = array<i32>} : memref<1x16x4x4x128xf32, #tpu.memory_space<vmem>>, vector<1x1x4x4x128xf32>,
    %c0_26 = arith.constant 0 : index
    %c0_27 = arith.constant 0 : index
    %c2_28 = arith.constant 2 : index
    %c0_29 = arith.constant 0 : index
    %c256_30 = arith.constant 256 : index
    %15 = vector.load %arg2[%c0_26, %c0_27, %c2_28, %c0_29, %c256_30] : memref<1x4x4x4x512xf32, #tpu.memory_space<vmem>>, vector<1x4x1x4x128xf32>
    %16 = vector.shape_cast %15 : vector<1x4x1x4x128xf32> to vector<1x4x4x128xf32>
    %c0_31 = arith.constant 0 : index
    %c3 = arith.constant 3 : index
    %c0_32 = arith.constant 0 : index
    %c0_33 = arith.constant 0 : index
    %c0_34 = arith.constant 0 : index
    %17 = vector.load %arg3[%c0_31, %c3, %c0_32, %c0_33, %c0_34] : memref<1x16x4x4x128xf32, #tpu.memory_space<vmem>>, vector<1x1x4x4x128xf32>
    %18 = vector.shape_cast %17 : vector<1x1x4x4x128xf32> to vector<1x4x4x128xf32>
    %19 = vector.shape_cast %16 : vector<1x4x4x128xf32> to vector<1x1x4x4x128xf32>
    tpu.vector_store %arg3[%c0_31, %c3, %c0_32, %c0_33, %c0_34], %19 {strides = array<i32>} : memref<1x16x4x4x128xf32, #tpu.memory_space<vmem>>, vector<1x1x4x4x128xf32>,
    %c0_35 = arith.constant 0 : index
    %c0_36 = arith.constant 0 : index
    %c0_37 = arith.constant 0 : index
    %c0_38 = arith.constant 0 : index
    %c128 = arith.constant 128 : index
    %20 = vector.load %arg2[%c0_35, %c0_36, %c0_37, %c0_38, %c128] : memref<1x4x4x4x512xf32, #tpu.memory_space<vmem>>, vector<1x4x1x4x128xf32>
    %21 = vector.shape_cast %20 : vector<1x4x1x4x128xf32> to vector<1x4x4x128xf32>
    %c0_39 = arith.constant 0 : index
    %c4 = arith.constant 4 : index
    %c0_40 = arith.constant 0 : index
    %c0_41 = arith.constant 0 : index
    %c0_42 = arith.constant 0 : index
    %22 = vector.load %arg3[%c0_39, %c4, %c0_40, %c0_41, %c0_42] : memref<1x16x4x4x128xf32, #tpu.memory_space<vmem>>, vector<1x1x4x4x128xf32>
    %23 = vector.shape_cast %22 : vector<1x1x4x4x128xf32> to vector<1x4x4x128xf32>
    %24 = vector.shape_cast %21 : vector<1x4x4x128xf32> to vector<1x1x4x4x128xf32>
    tpu.vector_store %arg3[%c0_39, %c4, %c0_40, %c0_41, %c0_42], %24 {strides = array<i32>} : memref<1x16x4x4x128xf32, #tpu.memory_space<vmem>>, vector<1x1x4x4x128xf32>,
    %c0_43 = arith.constant 0 : index
    %c0_44 = arith.constant 0 : index
    %c0_45 = arith.constant 0 : index
    %c0_46 = arith.constant 0 : index
    %c384 = arith.constant 384 : index
    %25 = vector.load %arg2[%c0_43, %c0_44, %c0_45, %c0_46, %c384] : memref<1x4x4x4x512xf32, #tpu.memory_space<vmem>>, vector<1x4x1x4x128xf32>
    %26 = vector.shape_cast %25 : vector<1x4x1x4x128xf32> to vector<1x4x4x128xf32>
    %c0_47 = arith.constant 0 : index
    %c5 = arith.constant 5 : index
    %c0_48 = arith.constant 0 : index
    %c0_49 = arith.constant 0 : index
    %c0_50 = arith.constant 0 : index
    %27 = vector.load %arg3[%c0_47, %c5, %c0_48, %c0_49, %c0_50] : memref<1x16x4x4x128xf32, #tpu.memory_space<vmem>>, vector<1x1x4x4x128xf32>
    %28 = vector.shape_cast %27 : vector<1x1x4x4x128xf32> to vector<1x4x4x128xf32>
    %29 = vector.shape_cast %26 : vector<1x4x4x128xf32> to vector<1x1x4x4x128xf32>
    tpu.vector_store %arg3[%c0_47, %c5, %c0_48, %c0_49, %c0_50], %29 {strides = array<i32>} : memref<1x16x4x4x128xf32, #tpu.memory_space<vmem>>, vector<1x1x4x4x128xf32>,
    %c0_51 = arith.constant 0 : index
    %c0_52 = arith.constant 0 : index
    %c2_53 = arith.constant 2 : index
    %c0_54 = arith.constant 0 : index
    %c128_55 = arith.constant 128 : index
    %30 = vector.load %arg2[%c0_51, %c0_52, %c2_53, %c0_54, %c128_55] : memref<1x4x4x4x512xf32, #tpu.memory_space<vmem>>, vector<1x4x1x4x128xf32>
    %31 = vector.shape_cast %30 : vector<1x4x1x4x128xf32> to vector<1x4x4x128xf32>
    %c0_56 = arith.constant 0 : index
    %c6 = arith.constant 6 : index
    %c0_57 = arith.constant 0 : index
    %c0_58 = arith.constant 0 : index
    %c0_59 = arith.constant 0 : index
    %32 = vector.load %arg3[%c0_56, %c6, %c0_57, %c0_58, %c0_59] : memref<1x16x4x4x128xf32, #tpu.memory_space<vmem>>, vector<1x1x4x4x128xf32>
    %33 = vector.shape_cast %32 : vector<1x1x4x4x128xf32> to vector<1x4x4x128xf32>
    %34 = vector.shape_cast %31 : vector<1x4x4x128xf32> to vector<1x1x4x4x128xf32>
    tpu.vector_store %arg3[%c0_56, %c6, %c0_57, %c0_58, %c0_59], %34 {strides = array<i32>} : memref<1x16x4x4x128xf32, #tpu.memory_space<vmem>>, vector<1x1x4x4x128xf32>,
    %c0_60 = arith.constant 0 : index
    %c0_61 = arith.constant 0 : index
    %c2_62 = arith.constant 2 : index
    %c0_63 = arith.constant 0 : index
    %c384_64 = arith.constant 384 : index
    %35 = vector.load %arg2[%c0_60, %c0_61, %c2_62, %c0_63, %c384_64] : memref<1x4x4x4x512xf32, #tpu.memory_space<vmem>>, vector<1x4x1x4x128xf32>
    %36 = vector.shape_cast %35 : vector<1x4x1x4x128xf32> to vector<1x4x4x128xf32>
    %c0_65 = arith.constant 0 : index
    %c7 = arith.constant 7 : index
    %c0_66 = arith.constant 0 : index
    %c0_67 = arith.constant 0 : index
    %c0_68 = arith.constant 0 : index
    %37 = vector.load %arg3[%c0_65, %c7, %c0_66, %c0_67, %c0_68] : memref<1x16x4x4x128xf32, #tpu.memory_space<vmem>>, vector<1x1x4x4x128xf32>
    %38 = vector.shape_cast %37 : vector<1x1x4x4x128xf32> to vector<1x4x4x128xf32>
    %39 = vector.shape_cast %36 : vector<1x4x4x128xf32> to vector<1x1x4x4x128xf32>
    tpu.vector_store %arg3[%c0_65, %c7, %c0_66, %c0_67, %c0_68], %39 {strides = array<i32>} : memref<1x16x4x4x128xf32, #tpu.memory_space<vmem>>, vector<1x1x4x4x128xf32>,
    %c0_69 = arith.constant 0 : index
    %c0_70 = arith.constant 0 : index
    %c1_71 = arith.constant 1 : index
    %c0_72 = arith.constant 0 : index
    %c0_73 = arith.constant 0 : index
    %40 = vector.load %arg2[%c0_69, %c0_70, %c1_71, %c0_72, %c0_73] : memref<1x4x4x4x512xf32, #tpu.memory_space<vmem>>, vector<1x4x1x4x128xf32>
    %41 = vector.shape_cast %40 : vector<1x4x1x4x128xf32> to vector<1x4x4x128xf32>
    %c0_74 = arith.constant 0 : index
    %c8 = arith.constant 8 : index
    %c0_75 = arith.constant 0 : index
    %c0_76 = arith.constant 0 : index
    %c0_77 = arith.constant 0 : index
    %42 = vector.load %arg3[%c0_74, %c8, %c0_75, %c0_76, %c0_77] : memref<1x16x4x4x128xf32, #tpu.memory_space<vmem>>, vector<1x1x4x4x128xf32>
    %43 = vector.shape_cast %42 : vector<1x1x4x4x128xf32> to vector<1x4x4x128xf32>
    %44 = vector.shape_cast %41 : vector<1x4x4x128xf32> to vector<1x1x4x4x128xf32>
    tpu.vector_store %arg3[%c0_74, %c8, %c0_75, %c0_76, %c0_77], %44 {strides = array<i32>} : memref<1x16x4x4x128xf32, #tpu.memory_space<vmem>>, vector<1x1x4x4x128xf32>,
    %c0_78 = arith.constant 0 : index
    %c0_79 = arith.constant 0 : index
    %c1_80 = arith.constant 1 : index
    %c0_81 = arith.constant 0 : index
    %c256_82 = arith.constant 256 : index
    %45 = vector.load %arg2[%c0_78, %c0_79, %c1_80, %c0_81, %c256_82] : memref<1x4x4x4x512xf32, #tpu.memory_space<vmem>>, vector<1x4x1x4x128xf32>
    %46 = vector.shape_cast %45 : vector<1x4x1x4x128xf32> to vector<1x4x4x128xf32>
    %c0_83 = arith.constant 0 : index
    %c9 = arith.constant 9 : index
    %c0_84 = arith.constant 0 : index
    %c0_85 = arith.constant 0 : index
    %c0_86 = arith.constant 0 : index
    %47 = vector.load %arg3[%c0_83, %c9, %c0_84, %c0_85, %c0_86] : memref<1x16x4x4x128xf32, #tpu.memory_space<vmem>>, vector<1x1x4x4x128xf32>
    %48 = vector.shape_cast %47 : vector<1x1x4x4x128xf32> to vector<1x4x4x128xf32>
    %49 = vector.shape_cast %46 : vector<1x4x4x128xf32> to vector<1x1x4x4x128xf32>
    tpu.vector_store %arg3[%c0_83, %c9, %c0_84, %c0_85, %c0_86], %49 {strides = array<i32>} : memref<1x16x4x4x128xf32, #tpu.memory_space<vmem>>, vector<1x1x4x4x128xf32>,
    %c0_87 = arith.constant 0 : index
    %c0_88 = arith.constant 0 : index
    %c3_89 = arith.constant 3 : index
    %c0_90 = arith.constant 0 : index
    %c0_91 = arith.constant 0 : index
    %50 = vector.load %arg2[%c0_87, %c0_88, %c3_89, %c0_90, %c0_91] : memref<1x4x4x4x512xf32, #tpu.memory_space<vmem>>, vector<1x4x1x4x128xf32>
    %51 = vector.shape_cast %50 : vector<1x4x1x4x128xf32> to vector<1x4x4x128xf32>
    %c0_92 = arith.constant 0 : index
    %c10 = arith.constant 10 : index
    %c0_93 = arith.constant 0 : index
    %c0_94 = arith.constant 0 : index
    %c0_95 = arith.constant 0 : index
    %52 = vector.load %arg3[%c0_92, %c10, %c0_93, %c0_94, %c0_95] : memref<1x16x4x4x128xf32, #tpu.memory_space<vmem>>, vector<1x1x4x4x128xf32>
    %53 = vector.shape_cast %52 : vector<1x1x4x4x128xf32> to vector<1x4x4x128xf32>
    %54 = vector.shape_cast %51 : vector<1x4x4x128xf32> to vector<1x1x4x4x128xf32>
    tpu.vector_store %arg3[%c0_92, %c10, %c0_93, %c0_94, %c0_95], %54 {strides = array<i32>} : memref<1x16x4x4x128xf32, #tpu.memory_space<vmem>>, vector<1x1x4x4x128xf32>,
    %c0_96 = arith.constant 0 : index
    %c0_97 = arith.constant 0 : index
    %c3_98 = arith.constant 3 : index
    %c0_99 = arith.constant 0 : index
    %c256_100 = arith.constant 256 : index
    %55 = vector.load %arg2[%c0_96, %c0_97, %c3_98, %c0_99, %c256_100] : memref<1x4x4x4x512xf32, #tpu.memory_space<vmem>>, vector<1x4x1x4x128xf32>
    %56 = vector.shape_cast %55 : vector<1x4x1x4x128xf32> to vector<1x4x4x128xf32>
    %c0_101 = arith.constant 0 : index
    %c11 = arith.constant 11 : index
    %c0_102 = arith.constant 0 : index
    %c0_103 = arith.constant 0 : index
    %c0_104 = arith.constant 0 : index
    %57 = vector.load %arg3[%c0_101, %c11, %c0_102, %c0_103, %c0_104] : memref<1x16x4x4x128xf32, #tpu.memory_space<vmem>>, vector<1x1x4x4x128xf32>
    %58 = vector.shape_cast %57 : vector<1x1x4x4x128xf32> to vector<1x4x4x128xf32>
    %59 = vector.shape_cast %56 : vector<1x4x4x128xf32> to vector<1x1x4x4x128xf32>
    tpu.vector_store %arg3[%c0_101, %c11, %c0_102, %c0_103, %c0_104], %59 {strides = array<i32>} : memref<1x16x4x4x128xf32, #tpu.memory_space<vmem>>, vector<1x1x4x4x128xf32>,
    %c0_105 = arith.constant 0 : index
    %c0_106 = arith.constant 0 : index
    %c1_107 = arith.constant 1 : index
    %c0_108 = arith.constant 0 : index
    %c128_109 = arith.constant 128 : index
    %60 = vector.load %arg2[%c0_105, %c0_106, %c1_107, %c0_108, %c128_109] : memref<1x4x4x4x512xf32, #tpu.memory_space<vmem>>, vector<1x4x1x4x128xf32>
    %61 = vector.shape_cast %60 : vector<1x4x1x4x128xf32> to vector<1x4x4x128xf32>
    %c0_110 = arith.constant 0 : index
    %c12 = arith.constant 12 : index
    %c0_111 = arith.constant 0 : index
    %c0_112 = arith.constant 0 : index
    %c0_113 = arith.constant 0 : index
    %62 = vector.load %arg3[%c0_110, %c12, %c0_111, %c0_112, %c0_113] : memref<1x16x4x4x128xf32, #tpu.memory_space<vmem>>, vector<1x1x4x4x128xf32>
    %63 = vector.shape_cast %62 : vector<1x1x4x4x128xf32> to vector<1x4x4x128xf32>
    %64 = vector.shape_cast %61 : vector<1x4x4x128xf32> to vector<1x1x4x4x128xf32>
    tpu.vector_store %arg3[%c0_110, %c12, %c0_111, %c0_112, %c0_113], %64 {strides = array<i32>} : memref<1x16x4x4x128xf32, #tpu.memory_space<vmem>>, vector<1x1x4x4x128xf32>,
    %c0_114 = arith.constant 0 : index
    %c0_115 = arith.constant 0 : index
    %c1_116 = arith.constant 1 : index
    %c0_117 = arith.constant 0 : index
    %c384_118 = arith.constant 384 : index
    %65 = vector.load %arg2[%c0_114, %c0_115, %c1_116, %c0_117, %c384_118] : memref<1x4x4x4x512xf32, #tpu.memory_space<vmem>>, vector<1x4x1x4x128xf32>
    %66 = vector.shape_cast %65 : vector<1x4x1x4x128xf32> to vector<1x4x4x128xf32>
    %c0_119 = arith.constant 0 : index
    %c13 = arith.constant 13 : index
    %c0_120 = arith.constant 0 : index
    %c0_121 = arith.constant 0 : index
    %c0_122 = arith.constant 0 : index
    %67 = vector.load %arg3[%c0_119, %c13, %c0_120, %c0_121, %c0_122] : memref<1x16x4x4x128xf32, #tpu.memory_space<vmem>>, vector<1x1x4x4x128xf32>
    %68 = vector.shape_cast %67 : vector<1x1x4x4x128xf32> to vector<1x4x4x128xf32>
    %69 = vector.shape_cast %66 : vector<1x4x4x128xf32> to vector<1x1x4x4x128xf32>
    tpu.vector_store %arg3[%c0_119, %c13, %c0_120, %c0_121, %c0_122], %69 {strides = array<i32>} : memref<1x16x4x4x128xf32, #tpu.memory_space<vmem>>, vector<1x1x4x4x128xf32>,
    %c0_123 = arith.constant 0 : index
    %c0_124 = arith.constant 0 : index
    %c3_125 = arith.constant 3 : index
    %c0_126 = arith.constant 0 : index
    %c128_127 = arith.constant 128 : index
    %70 = vector.load %arg2[%c0_123, %c0_124, %c3_125, %c0_126, %c128_127] : memref<1x4x4x4x512xf32, #tpu.memory_space<vmem>>, vector<1x4x1x4x128xf32>
    %71 = vector.shape_cast %70 : vector<1x4x1x4x128xf32> to vector<1x4x4x128xf32>
    %c0_128 = arith.constant 0 : index
    %c14 = arith.constant 14 : index
    %c0_129 = arith.constant 0 : index
    %c0_130 = arith.constant 0 : index
    %c0_131 = arith.constant 0 : index
    %72 = vector.load %arg3[%c0_128, %c14, %c0_129, %c0_130, %c0_131] : memref<1x16x4x4x128xf32, #tpu.memory_space<vmem>>, vector<1x1x4x4x128xf32>
    %73 = vector.shape_cast %72 : vector<1x1x4x4x128xf32> to vector<1x4x4x128xf32>
    %74 = vector.shape_cast %71 : vector<1x4x4x128xf32> to vector<1x1x4x4x128xf32>
    tpu.vector_store %arg3[%c0_128, %c14, %c0_129, %c0_130, %c0_131], %74 {strides = array<i32>} : memref<1x16x4x4x128xf32, #tpu.memory_space<vmem>>, vector<1x1x4x4x128xf32>,
    %c0_132 = arith.constant 0 : index
    %c0_133 = arith.constant 0 : index
    %c3_134 = arith.constant 3 : index
    %c0_135 = arith.constant 0 : index
    %c384_136 = arith.constant 384 : index
    %75 = vector.load %arg2[%c0_132, %c0_133, %c3_134, %c0_135, %c384_136] : memref<1x4x4x4x512xf32, #tpu.memory_space<vmem>>, vector<1x4x1x4x128xf32>
    %76 = vector.shape_cast %75 : vector<1x4x1x4x128xf32> to vector<1x4x4x128xf32>
    %c0_137 = arith.constant 0 : index
    %c15 = arith.constant 15 : index
    %c0_138 = arith.constant 0 : index
    %c0_139 = arith.constant 0 : index
    %c0_140 = arith.constant 0 : index
    %77 = vector.load %arg3[%c0_137, %c15, %c0_138, %c0_139, %c0_140] : memref<1x16x4x4x128xf32, #tpu.memory_space<vmem>>, vector<1x1x4x4x128xf32>
    %78 = vector.shape_cast %77 : vector<1x1x4x4x128xf32> to vector<1x4x4x128xf32>
    %79 = vector.shape_cast %76 : vector<1x4x4x128xf32> to vector<1x1x4x4x128xf32>
    tpu.vector_store %arg3[%c0_137, %c15, %c0_138, %c0_139, %c0_140], %79 {strides = array<i32>} : memref<1x16x4x4x128xf32, #tpu.memory_space<vmem>>, vector<1x1x4x4x128xf32>,
    return
  }
  func.func @transform_0(%arg0: i32, %arg1: i32) -> (i32, i32, i32, i32, i32) {
    %c0_i32 = arith.constant 0 : i32
    %c0_i32_0 = arith.constant 0 : i32
    %c0_i32_1 = arith.constant 0 : i32
    %c0_i32_2 = arith.constant 0 : i32
    return %arg0, %arg1, %c0_i32, %c0_i32_0, %c0_i32_1 : i32, i32, i32, i32, i32
  }
  func.func @transform_1(%arg0: i32, %arg1: i32) -> (i32, i32, i32, i32, i32) {
    %c0_i32 = arith.constant 0 : i32
    %c0_i32_0 = arith.constant 0 : i32
    %c0_i32_1 = arith.constant 0 : i32
    %c0_i32_2 = arith.constant 0 : i32
    return %arg0, %c0_i32, %arg1, %c0_i32_0, %c0_i32_1 : i32, i32, i32, i32, i32
  }
}

</mosaic_0001>

<bundles_post_ra>
// kernel: tpu_custom_call.1
= control target key start
LH: loop header
LB: loop body
LE: loop exit
PB: predicated region body
PF: predicated region fallthrough
CT: control target
= control target key end

     0   :  { %6 = vsyncpa [#allocation3], 0  ;;  %s981_s0 = inlined_call_operand.hbm [shape: f32[2,4,4,4,512], index: 0, kind: input, shape index: {}]   ;;  %s982_s1 = inlined_call_operand.hbm [shape: f32[2,16,4,4,128], index: 1, kind: output, shape index: {}]  }
   0x1   :  { %8 = vsyncpa [#allocation3 + $0x1], 0 }
   0x2   :  { %9 = vsyncpa [#allocation4], 0 }
   0x3   :  { %11 = vsyncpa [#allocation4 + $0x1], 0  ;;  %s728_s6 = smov 0   ;;  %s730_s7 = smov 0  }
   0x4   :  { %s732_s8 = smov 0   ;;  %s734_s9 = smov 0  }
   0x5   :  { %s736_s10 = smov 0   ;;  %s738_s11 = smov 0  }
   0x6 LB: > { %s409_s12 = sadd.s32 4294967295, %s712_s11   ;;  %s410_s13 = sadd.s32 4294967294, %s712_s11   ;;  %s712_s11 = sphi %s738_s11, %s17_s11   ;;  %s708_s10 = sphi %s736_s10, %s991_s10   ;;  %s704_s9 = sphi %s734_s9, %s990_s9   ;;  %s700_s8 = sphi %s732_s8, %s989_s8   ;;  %s696_s7 = sphi %s730_s7, %s988_s7   ;;  %s692_s6 = sphi %s728_s6, %s987_s6  }
   0x7   : > { %s29_s14 = sadd.s32 1, %s708_s10  ;;  %s38_s15 = sadd.s32 1, %s700_s8 }
   0x8   : > { %p31_p0 = scmp.ge.s32.totalorder %s29_s14, 2  ;;  %p45_p1 = scmp.ne.s32.totalorder %s700_s8, %s696_s7 }
   0x9   : > { %p46_p2 = scmp.eq.s32.totalorder %s712_s11, 0  ;;  %p51_p3 = scmp.ne.s32.totalorder %s696_s7, %s692_s6 }
   0xa   : > { %s993_s14 = smov (%p31_p0, %s29_s14), 0  ;;  %p52_p5 = scmp.eq.s32.totalorder %s409_s12, 0 }
   0xb   : > { %p769_p4 = por %p46_p2, %p45_p1  ;;  %s33_s17 = ssub.s32 %s708_s10, %s993_s14 }
   0xc   : > { %p77_p6 = scmp.eq.s32.totalorder %s409_s12, 1  ;;  %p36_p7 = scmp.eq.s32.totalorder %s33_s17, 0 }
   0xd   : > { %p775_p8 = por %p52_p5, %p51_p3  ;;  %p83_p10 = scmp.eq.s32.totalorder %s410_s13, 1 }
   0xe   : > { %p779_p9 = por %p77_p6, %p45_p1  ;;  %p412_p12 = scmp.ge.s32.totalorder %s712_s11, 2 }
   0xf   : > { %s784_s20 = scalar_select %p36_p7, %s700_s8, %s38_s15  }
  0x10   : > { %p786_p11 = por %p83_p10, %p51_p3  ;;  %p546_p13 = scmp.lt.s32.totalorder %s712_s11, 2 }
  0x11   : > { %s103_s22 = sand.u32 1, %s700_s8   ;;  %s532_s24 = sshll.u32 %s708_s10, 8 }
  0x12   : > { %s413_s23 = sshll.u32 %s103_s22, 8  ;;  %s115_s27 = scalar_lea.hbm %s981_s0, %s532_s24 }
  0x13   : > { %s107_s28 = scalar_lea.vmem [#allocation2], %s413_s23  ;;  %s116_s30 = sshll.u32 %s115_s27, 4  ;;  %s117_s30 = int_to_ptr.hbm [resolvable:$true] %s116_s30 }
  0x14   : > { %s118_s29 = sshll.u32 %s107_s28, 4  ;;  %p539_p0 = pnand %p546_p13, %p769_p4  ;;  %s119_s29 = int_to_ptr.vmem [resolvable:$true] %s118_s29 }
  0x15   : > { %p416_p1 = scmp.ge.s32.totalorder %s712_s11, 1  ;;  %s104_s2 = scalar_lea.sflag [#allocation3], %s103_s22 }
  0x16   : > { %s714_s3 = smov 256   ;;  %s715_s4 = smov 16  }
  0x17   : > { %541 = dma.hbm_to_vmem [thread:$0]  (!%p539_p0), %s117_s30, 4096, %s119_s29, %s104_s2, %s714_s3, %s714_s3, %s715_s4  }
  0x18   : > { %p126_p2 = scmp.lt.s32.totalorder %s712_s11, 3 }
  0x1a   : > { %p127_p3 = pnand %p416_p1, %p126_p2 }
  0x1b   : > { %s802_s5 = sand.u32 (!%p127_p3), 1, %s696_s7  }
  0x1c   : > { %130 = sbr.rel (%p127_p3) target bundleno = 102 (0x66), region = 24  ;;  %s417_s12 = sshll.u32 (!%p127_p3), %s802_s5, 8 }
  0x1d   : > { %s133_s13 = scalar_lea.sflag (!%p127_p3), [#allocation3], %s802_s5  ;;  %s806_s15 = scalar_lea.vmem (!%p127_p3), [#allocation2], %s417_s12 }
  0x21   : > { %683 = dma.done.wait (%p775_p8), %s133_s13, 4096  }
  0x22   : > { %685 = vsyncadd (%p775_p8), %s133_s13, 4294963200  ;;  %v158_v0 = vld [vmem:[%s806_s15] sm:$0xf]  ;;  %s815_s16 = scalar_lea.vmem [#allocation5], %s417_s12  ;;  %v166_v4 = vld [vmem:[%s806_s15 + $0x8] sm:$0xf] }
  0x23   : > { %v159_v1 = vld [vmem:[%s806_s15 + $0x40] sm:$0xf]  ;;  %162 = vst [vmem:[%s815_s16] sm:$0xf] %v158_v0  ;;  %v167_v5 = vld [vmem:[%s806_s15 + $0x48] sm:$0xf]  ;;  %s533_s17 = sshll.u32 %s704_s9, 8 }
  0x24   : > { %v160_v2 = vld [vmem:[%s806_s15 + $0x80] sm:$0xf]  ;;  %163 = vst [vmem:[%s815_s16 + $0x4] sm:$0xf] %v159_v1  ;;  %v168_v6 = vld [vmem:[%s806_s15 + $0x88] sm:$0xf]  ;;  %s318_s23 = scalar_lea.hbm %s982_s1, %s533_s17 }
  0x25   : > { %v161_v3 = vld [vmem:[%s806_s15 + $0xc0] sm:$0xf]  ;;  %164 = vst [vmem:[%s815_s16 + $0x8] sm:$0xf] %v160_v2  ;;  %v169_v7 = vld [vmem:[%s806_s15 + $0xc8] sm:$0xf] }
  0x26   : > { %165 = vst [vmem:[%s815_s16 + $0xc] sm:$0xf] %v161_v3  ;;  %v423_v8 = vld [vmem:[%s806_s15 + $0x20] sm:$0xf]  ;;  %v431_v12 = vld [vmem:[%s806_s15 + $0x28] sm:$0xf] }
  0x27   : > { %419 = vst [vmem:[%s815_s16 + $0x10] sm:$0xf] %v166_v4  ;;  %v424_v9 = vld [vmem:[%s806_s15 + $0x60] sm:$0xf]  ;;  %v432_v13 = vld [vmem:[%s806_s15 + $0x68] sm:$0xf] }
  0x28   : > { %420 = vst [vmem:[%s815_s16 + $0x14] sm:$0xf] %v167_v5  ;;  %v425_v10 = vld [vmem:[%s806_s15 + $0xa0] sm:$0xf]  ;;  %v433_v14 = vld [vmem:[%s806_s15 + $0xa8] sm:$0xf] }
  0x29   : > { %421 = vst [vmem:[%s815_s16 + $0x18] sm:$0xf] %v168_v6  ;;  %v426_v11 = vld [vmem:[%s806_s15 + $0xe0] sm:$0xf]  ;;  %v434_v15 = vld [vmem:[%s806_s15 + $0xe8] sm:$0xf] }
  0x2a   : > { %422 = vst [vmem:[%s815_s16 + $0x1c] sm:$0xf] %v169_v7  ;;  %v194_v16 = vld [vmem:[%s806_s15 + $0x4] sm:$0xf]  ;;  %v203_v20 = vld [vmem:[%s806_s15 + $0xc] sm:$0xf] }
  0x2b   : > { %427 = vst [vmem:[%s815_s16 + $0x20] sm:$0xf] %v423_v8  ;;  %v195_v17 = vld [vmem:[%s806_s15 + $0x44] sm:$0xf]  ;;  %v204_v21 = vld [vmem:[%s806_s15 + $0x4c] sm:$0xf] }
  0x2c   : > { %428 = vst [vmem:[%s815_s16 + $0x24] sm:$0xf] %v424_v9  ;;  %v196_v18 = vld [vmem:[%s806_s15 + $0x84] sm:$0xf]  ;;  %v205_v22 = vld [vmem:[%s806_s15 + $0x8c] sm:$0xf] }
  0x2d   : > { %429 = vst [vmem:[%s815_s16 + $0x28] sm:$0xf] %v425_v10  ;;  %v197_v19 = vld [vmem:[%s806_s15 + $0xc4] sm:$0xf]  ;;  %v206_v23 = vld [vmem:[%s806_s15 + $0xcc] sm:$0xf] }
  0x2e   : > { %430 = vst [vmem:[%s815_s16 + $0x2c] sm:$0xf] %v426_v11  ;;  %v447_v24 = vld [vmem:[%s806_s15 + $0x24] sm:$0xf]  ;;  %v455_v28 = vld [vmem:[%s806_s15 + $0x2c] sm:$0xf] }
  0x2f   : > { %435 = vst [vmem:[%s815_s16 + $0x30] sm:$0xf] %v431_v12  ;;  %v448_v25 = vld [vmem:[%s806_s15 + $0x64] sm:$0xf]  ;;  %v456_v29 = vld [vmem:[%s806_s15 + $0x6c] sm:$0xf] }
  0x30   : > { %436 = vst [vmem:[%s815_s16 + $0x34] sm:$0xf] %v432_v13  ;;  %v449_v26 = vld [vmem:[%s806_s15 + $0xa4] sm:$0xf]  ;;  %v457_v30 = vld [vmem:[%s806_s15 + $0xac] sm:$0xf] }
  0x31   : > { %437 = vst [vmem:[%s815_s16 + $0x38] sm:$0xf] %v433_v14  ;;  %v450_v27 = vld [vmem:[%s806_s15 + $0xe4] sm:$0xf]  ;;  %v458_v31 = vld [vmem:[%s806_s15 + $0xec] sm:$0xf] }
  0x32   : > { %438 = vst [vmem:[%s815_s16 + $0x3c] sm:$0xf] %v434_v15  ;;  %v463_v32 = vld [vmem:[%s806_s15 + $0x10] sm:$0xf]  ;;  %v471_v36 = vld [vmem:[%s806_s15 + $0x18] sm:$0xf] }
  0x33   : > { %439 = vst [vmem:[%s815_s16 + $0x40] sm:$0xf] %v194_v16  ;;  %v464_v33 = vld [vmem:[%s806_s15 + $0x50] sm:$0xf]  ;;  %v472_v37 = vld [vmem:[%s806_s15 + $0x58] sm:$0xf] }
  0x34   : > { %440 = vst [vmem:[%s815_s16 + $0x44] sm:$0xf] %v195_v17  ;;  %v465_v34 = vld [vmem:[%s806_s15 + $0x90] sm:$0xf]  ;;  %v473_v38 = vld [vmem:[%s806_s15 + $0x98] sm:$0xf] }
  0x35   : > { %441 = vst [vmem:[%s815_s16 + $0x48] sm:$0xf] %v196_v18  ;;  %v466_v35 = vld [vmem:[%s806_s15 + $0xd0] sm:$0xf]  ;;  %v474_v39 = vld [vmem:[%s806_s15 + $0xd8] sm:$0xf] }
  0x36   : > { %442 = vst [vmem:[%s815_s16 + $0x4c] sm:$0xf] %v197_v19  ;;  %v479_v40 = vld [vmem:[%s806_s15 + $0x30] sm:$0xf]  ;;  %v487_v44 = vld [vmem:[%s806_s15 + $0x38] sm:$0xf] }
  0x37   : > { %443 = vst [vmem:[%s815_s16 + $0x50] sm:$0xf] %v203_v20  ;;  %v480_v41 = vld [vmem:[%s806_s15 + $0x70] sm:$0xf]  ;;  %v488_v45 = vld [vmem:[%s806_s15 + $0x78] sm:$0xf] }
  0x38   : > { %444 = vst [vmem:[%s815_s16 + $0x54] sm:$0xf] %v204_v21  ;;  %v481_v42 = vld [vmem:[%s806_s15 + $0xb0] sm:$0xf]  ;;  %v489_v46 = vld [vmem:[%s806_s15 + $0xb8] sm:$0xf] }
  0x39   : > { %445 = vst [vmem:[%s815_s16 + $0x58] sm:$0xf] %v205_v22  ;;  %v482_v43 = vld [vmem:[%s806_s15 + $0xf0] sm:$0xf]  ;;  %v490_v47 = vld [vmem:[%s806_s15 + $0xf8] sm:$0xf] }
  0x3a   : > { %446 = vst [vmem:[%s815_s16 + $0x5c] sm:$0xf] %v206_v23  ;;  %v495_v48 = vld [vmem:[%s806_s15 + $0x14] sm:$0xf]  ;;  %v503_v52 = vld [vmem:[%s806_s15 + $0x1c] sm:$0xf] }
  0x3b   : > { %451 = vst [vmem:[%s815_s16 + $0x60] sm:$0xf] %v447_v24  ;;  %v496_v49 = vld [vmem:[%s806_s15 + $0x54] sm:$0xf]  ;;  %v504_v53 = vld [vmem:[%s806_s15 + $0x5c] sm:$0xf] }
  0x3c   : > { %452 = vst [vmem:[%s815_s16 + $0x64] sm:$0xf] %v448_v25  ;;  %v497_v50 = vld [vmem:[%s806_s15 + $0x94] sm:$0xf]  ;;  %v505_v54 = vld [vmem:[%s806_s15 + $0x9c] sm:$0xf] }
  0x3d   : > { %453 = vst [vmem:[%s815_s16 + $0x68] sm:$0xf] %v449_v26  ;;  %v498_v51 = vld [vmem:[%s806_s15 + $0xd4] sm:$0xf]  ;;  %v506_v55 = vld [vmem:[%s806_s15 + $0xdc] sm:$0xf] }
  0x3e   : > { %454 = vst [vmem:[%s815_s16 + $0x6c] sm:$0xf] %v450_v27  ;;  %v511_v56 = vld [vmem:[%s806_s15 + $0x34] sm:$0xf]  ;;  %v519_v60 = vld [vmem:[%s806_s15 + $0x3c] sm:$0xf] }
  0x3f   : > { %459 = vst [vmem:[%s815_s16 + $0x70] sm:$0xf] %v455_v28  ;;  %v512_v57 = vld [vmem:[%s806_s15 + $0x74] sm:$0xf]  ;;  %s319_s9 = sshll.u32 %s815_s16, 4  ;;  %s321_s24 = sshll.u32 %s318_s23, 4  ;;  %s320_s9 = int_to_ptr.vmem [resolvable:$true] %s319_s9  ;;  %s322_s24 = int_to_ptr.hbm [resolvable:$true] %s321_s24 }
  0x40   : > { %460 = vst [vmem:[%s815_s16 + $0x74] sm:$0xf] %v456_v29  ;;  %v513_v58 = vld [vmem:[%s806_s15 + $0xb4] sm:$0xf]  ;;  %v520_v61 = vld [vmem:[%s806_s15 + $0x7c] sm:$0xf] }
  0x41   : > { %461 = vst [vmem:[%s815_s16 + $0x78] sm:$0xf] %v457_v30  ;;  %v514_v59 = vld [vmem:[%s806_s15 + $0xf4] sm:$0xf]  ;;  %v521_v62 = vld [vmem:[%s806_s15 + $0xbc] sm:$0xf] }
  0x42   : > { %462 = vst [vmem:[%s815_s16 + $0x7c] sm:$0xf] %v458_v31  ;;  %v522_v63 = vld [vmem:[%s806_s15 + $0xfc] sm:$0xf]  ;;  %s305_s25 = scalar_lea.sflag [#allocation4], %s802_s5  ;;  %s644_s26 = sshra.s32 %s322_s24, 4  ;;  %s645_s26 = int_to_ptr.hbm [resolvable:$true] %s644_s26 }
  0x43   : > { %467 = vst [vmem:[%s815_s16 + $0x80] sm:$0xf] %v463_v32  ;;  %s646_s27 = scalar_lea.hbm %s645_s26, 256  ;;  %s650_s30 = scalar_lea.hbm %s982_s1, 512 }
  0x44   : > { %468 = vst [vmem:[%s815_s16 + $0x84] sm:$0xf] %v464_v33  ;;  %p647_p4 = scmp.ne.s32.totalorder %s645_s26, %s646_s27  ;;  %p651_p7 = scmp.lt.s32.totalorder %s645_s26, %s982_s1 }
  0x45   : > { %469 = vst [vmem:[%s815_s16 + $0x88] sm:$0xf] %v465_v34  ;;  %p652_p8 = scmp.lt.s32.totalorder %s650_s30, %s646_s27 }
  0x46   : > { %470 = vst [vmem:[%s815_s16 + $0x8c] sm:$0xf] %v466_v35  ;;  %p648_p5 = pnand %p647_p4, %p779_p9 }
  0x47   : > { %475 = vst [vmem:[%s815_s16 + $0x90] sm:$0xf] %v471_v36  ;;  %p653_p10 = por %p652_p8, %p651_p7 }
  0x48   : > { %476 = vst [vmem:[%s815_s16 + $0x94] sm:$0xf] %v472_v37  ;;  %p649_p6 = pneg %p648_p5 }
  0x49   : > { %477 = vst [vmem:[%s815_s16 + $0x98] sm:$0xf] %v473_v38 }
  0x4a   : > { %478 = vst [vmem:[%s815_s16 + $0x9c] sm:$0xf] %v474_v39  ;;  %p654_p13 = pnand %p653_p10, %p649_p6 }
  0x4b   : > { %483 = vst [vmem:[%s815_s16 + $0xa0] sm:$0xf] %v479_v40 }
  0x4c   : > { %484 = vst [vmem:[%s815_s16 + $0xa4] sm:$0xf] %v480_v41 }
  0x4d   : > { %485 = vst [vmem:[%s815_s16 + $0xa8] sm:$0xf] %v481_v42 }
  0x4e   : > { %486 = vst [vmem:[%s815_s16 + $0xac] sm:$0xf] %v482_v43 }
  0x4f   : > { %491 = vst [vmem:[%s815_s16 + $0xb0] sm:$0xf] %v487_v44 }
  0x50   : > { %492 = vst [vmem:[%s815_s16 + $0xb4] sm:$0xf] %v488_v45 }
  0x51   : > { %493 = vst [vmem:[%s815_s16 + $0xb8] sm:$0xf] %v489_v46 }
  0x52   : > { %494 = vst [vmem:[%s815_s16 + $0xbc] sm:$0xf] %v490_v47 }
  0x53   : > { %499 = vst [vmem:[%s815_s16 + $0xc0] sm:$0xf] %v495_v48 }
  0x54   : > { %500 = vst [vmem:[%s815_s16 + $0xc4] sm:$0xf] %v496_v49 }
  0x55   : > { %501 = vst [vmem:[%s815_s16 + $0xc8] sm:$0xf] %v497_v50 }
  0x56   : > { %502 = vst [vmem:[%s815_s16 + $0xcc] sm:$0xf] %v498_v51 }
  0x57   : > { %507 = vst [vmem:[%s815_s16 + $0xd0] sm:$0xf] %v503_v52 }
  0x58   : > { %508 = vst [vmem:[%s815_s16 + $0xd4] sm:$0xf] %v504_v53 }
  0x59   : > { %509 = vst [vmem:[%s815_s16 + $0xd8] sm:$0xf] %v505_v54 }
  0x5a   : > { %510 = vst [vmem:[%s815_s16 + $0xdc] sm:$0xf] %v506_v55 }
  0x5b   : > { %515 = vst [vmem:[%s815_s16 + $0xe0] sm:$0xf] %v511_v56 }
  0x5c   : > { %516 = vst [vmem:[%s815_s16 + $0xe4] sm:$0xf] %v512_v57 }
  0x5d   : > { %517 = vst [vmem:[%s815_s16 + $0xe8] sm:$0xf] %v513_v58 }
  0x5e   : > { %518 = vst [vmem:[%s815_s16 + $0xec] sm:$0xf] %v514_v59 }
  0x5f   : > { %523 = vst [vmem:[%s815_s16 + $0xf0] sm:$0xf] %v519_v60 }
  0x60   : > { %524 = vst [vmem:[%s815_s16 + $0xf4] sm:$0xf] %v520_v61 }
  0x61   : > { %525 = vst [vmem:[%s815_s16 + $0xf8] sm:$0xf] %v521_v62 }
  0x62   : > { %526 = vst [vmem:[%s815_s16 + $0xfc] sm:$0xf] %v522_v63 }
  0x63   : > { %657 = shalt.err (!%p654_p13)
}
  0x64   : > { %s716_s4 = smov 64   ;;  %s717_s5 = smov 4  }
  0x65   : > { %536 = dma.vmem_to_hbm [thread:$0]  (%p779_p9), %s320_s9, 4096, %s322_s24, %s305_s25, %s716_s4, %s716_s4, %s717_s5  }
  0x66 PF: > { %s336_s12 = sand.u32 1, %s692_s6   ;;  %p543_p0 = pnand %p412_p12, %p786_p11 }
  0x67   : > { %s337_s13 = scalar_lea.sflag [#allocation4], %s336_s12 }
  0x68   : > { %p544_p1 = pneg %p543_p0 }
  0x6a   : > { %687 = dma.done.wait (%p544_p1), %s337_s13, 4096  }
  0x6b   : > { %689 = vsyncadd (%p544_p1), %s337_s13, 4294963200  ;;  %s17_s11 = sadd.s32 1, %s712_s11   ;;  %s987_s6 = smov %s696_s7 }
  0x6c   : > { %p14_p2 = scmp.ge.s32.totalorder %s17_s11, 4   ;;  %s988_s7 = smov %s700_s8 }
  0x6d   : > { %s989_s8 = smov %s784_s20  ;;  %s990_s9 = smov %s708_s10 }
  0x6e   : > { %s991_s10 = smov %s993_s14  ;;  %16 = sbr.rel (!%p14_p2) target bundleno = 6 (0x6), region = 87 }
  0x73   :  { %343 = vsyncpa [#allocation3], 1 }
  0x74   :  { %345 = vsyncpa [#allocation3 + $0x1], 1 }
  0x75   :  { %346 = vsyncpa [#allocation4], 1 }
  0x76   :  { %348 = vsyncpa [#allocation4 + $0x1], 1 }

</bundles_post_ra>
